<compile_context>
chip_gen: v5e
topology: v5e:2x2
jax: 0.10.0
libtpu: 0.0.40
codegen_flags: <defaults>
</compile_context>

<pallas_src>
import functools

import jax
import jax.numpy as jnp
from jax.experimental import pallas as pl
from jax.experimental.pallas import tpu as pltpu

BN_EPS = 1e-5
LANE = 128
ROW_ALIGN = 16                      # bf16 packs 16 rows per vreg
DEFAULT_TM = 256                    # batch row tile (fine on v5e/v6e/v7x)
MIN_VMEM_LIMIT = 16 * 1024 * 1024   # v5e default scoped limit
MAX_VMEM_LIMIT = 64 * 1024 * 1024   # v7x physical VMEM per TensorCore


def _round_up(v, m):
    return (v + m - 1) // m * m


def _pad2(a, rows, cols, dtype=None):
    r, c = a.shape
    out = jnp.pad(a, ((0, rows - r), (0, cols - c)))
    return out.astype(dtype) if dtype is not None else out


def _compiler_params(resident_bytes, tile_bytes, semantics):
    """Explicit per-call VMEM budget: resident operands + double-buffered row
    tiles + headroom, clamped to what every TPU generation can provide."""
    need = int(resident_bytes + 2 * tile_bytes) + (2 << 20)
    limit = min(max(need, MIN_VMEM_LIMIT), MAX_VMEM_LIMIT)
    return pltpu.CompilerParams(dimension_semantics=semantics,
                                vmem_limit_bytes=limit)


# ----------------------------------------------------------------------------
# In-kernel helpers
# ----------------------------------------------------------------------------
def _accumulate_batch_stats(acc_ref, stats_out_ref, y, *, tile_rows, n_valid,
                            num_tiles):
    """Chan/Welford combine of per-tile (mean, M2) into VMEM scratch; the last
    tile writes (mean, biased var) to the stats output.

    Padded batch rows of `y` are exactly zero by construction (zero-padded x,
    masked h, no hidden-layer bias), so the tile sum is already exact and the
    padded rows' spurious M2 contribution (tile_mean^2 each) is removed
    analytically -- no (TM, H) mask multiply is needed.
    """
    t = pl.program_id(0)
    cnt = jnp.minimum(tile_rows, n_valid - t * tile_rows).astype(jnp.float32)

    tile_mean = jnp.sum(y, axis=0, keepdims=True) / cnt
    yc = y - tile_mean                                   # two-pass within tile
    tile_m2 = (jnp.sum(yc * yc, axis=0, keepdims=True)
               - (tile_rows - cnt) * (tile_mean * tile_mean))

    @pl.when(t == 0)
    def _():
        acc_ref[0:1, :] = tile_mean
        acc_ref[1:2, :] = tile_m2

    @pl.when(t > 0)
    def _():
        n_acc = (t * tile_rows).astype(jnp.float32)      # previous tiles are full
        mean_acc = acc_ref[0:1, :]
        m2_acc = acc_ref[1:2, :]
        delta = tile_mean - mean_acc
        frac = cnt / (n_acc + cnt)
        acc_ref[0:1, :] = mean_acc + delta * frac
        acc_ref[1:2, :] = m2_acc + tile_m2 + (delta * delta) * (n_acc * frac)

    @pl.when(t == num_tiles - 1)
    def _():
        stats_out_ref[0:1, :] = acc_ref[0:1, :]
        stats_out_ref[1:2, :] = acc_ref[1:2, :] * (1.0 / n_valid)  # biased var


def _bn_relu(y, stats_ref, gamma_ref, beta_ref):
    """Normalize with full-batch (mean, var), affine, ReLU -- one FMA + max."""
    mean = stats_ref[0:1, :]
    var = stats_ref[1:2, :]
    scale = gamma_ref[...] * jax.lax.rsqrt(var + BN_EPS)
    shift = beta_ref[...] - mean * scale
    return jnp.maximum(y * scale + shift, 0.0)


def _valid_row_mask(tile_rows, n_valid):
    t = pl.program_id(0)
    remaining = n_valid - t * tile_rows
    row_ids = jax.lax.broadcasted_iota(jnp.int32, (tile_rows, 1), 0)
    return (row_ids < remaining).astype(jnp.float32)


# ----------------------------------------------------------------------------
# Kernels
# ----------------------------------------------------------------------------
def _first_layer_kernel(x_ref, w_ref, y_ref, stats_ref, acc_ref, *,
                        tile_rows, n_valid, num_tiles):
    # Layer 1: bf16 x bf16 -> f32 matmul (hidden bias dropped) + batch stats.
    y = jnp.dot(x_ref[...], w_ref[...], preferred_element_type=jnp.float32)
    y_ref[...] = y
    _accumulate_batch_stats(acc_ref, stats_ref, y, tile_rows=tile_rows,
                            n_valid=n_valid, num_tiles=num_tiles)


def _mid_layer_kernel(y_in_ref, stats_in_ref, gamma_ref, beta_ref, w_ref,
                      y_ref, stats_ref, acc_ref, *, tile_rows, n_valid,
                      num_tiles, mask_rows):
    # BN(prev layer) + ReLU + next matmul + next layer's batch stats.
    h = _bn_relu(y_in_ref[...], stats_in_ref, gamma_ref, beta_ref)
    if mask_rows:
        # Keep padded batch rows exactly zero so they never contaminate the
        # next layer's matmul / statistics.
        h = h * _valid_row_mask(tile_rows, n_valid)
    y = jnp.dot(h.astype(jnp.bfloat16), w_ref[...],
                preferred_element_type=jnp.float32)
    y_ref[...] = y
    _accumulate_batch_stats(acc_ref, stats_ref, y, tile_rows=tile_rows,
                            n_valid=n_valid, num_tiles=num_tiles)


def _final_layer_kernel(y_in_ref, stats_in_ref, gamma_ref, beta_ref, w_ref,
                        b_ref, o_ref):
    # BN(last hidden) + ReLU + final linear (with bias).
    h = _bn_relu(y_in_ref[...], stats_in_ref, gamma_ref, beta_ref)
    y = jnp.dot(h.astype(jnp.bfloat16), w_ref[...],
                preferred_element_type=jnp.float32) + b_ref[...]
    o_ref[...] = y.astype(o_ref.dtype)


def _linear_kernel(x_ref, w_ref, b_ref, o_ref):
    y = jnp.dot(x_ref[...], w_ref[...],
                preferred_element_type=jnp.float32) + b_ref[...]
    o_ref[...] = y.astype(o_ref.dtype)


# ----------------------------------------------------------------------------
# Wrapper
# ----------------------------------------------------------------------------
def mlp_forward(params, x, num_layers, *, tile_rows=None):
    """Run the Pallas MLP forward pass.  x: (N, input_dim) float32."""
    n, input_dim = x.shape
    linears = params["linears"]
    out_dim = linears[-1][0].shape[1]

    # ---- row-tile / padding plan --------------------------------------------
    if tile_rows is None:
        tm = min(DEFAULT_TM, _round_up(n, ROW_ALIGN))
    else:
        tm = _round_up(tile_rows, ROW_ALIGN)
    n_pad = _round_up(n, tm)
    num_tiles = n_pad // tm
    has_row_pad = n_pad != n

    in_pad = _round_up(input_dim, LANE)
    out_pad = _round_up(out_dim, LANE)

    # bf16 MXU operands pre-cast in the wrapper (halves HBM->VMEM DMA bytes).
    x_p = _pad2(x, n_pad, in_pad, jnp.bfloat16)

    row_spec = lambda cols: pl.BlockSpec((tm, cols), lambda t: (t, 0))
    full_spec = lambda r, c: pl.BlockSpec((r, c), lambda t: (0, 0))

    # ---- num_layers == 1: plain tiled linear --------------------------------
    if num_layers == 1:
        w, b = linears[0]
        w_p = _pad2(w, in_pad, out_pad, jnp.bfloat16)
        b_p = _pad2(b, 1, out_pad)
        resident = w_p.size * 2 + b_p.size * 4
        tile_bytes = tm * in_pad * 2 + tm * out_pad * 4
        out_p = pl.pallas_call(
            _linear_kernel,
            grid=(num_tiles,),
            in_specs=[row_spec(in_pad), full_spec(in_pad, out_pad),
                      full_spec(1, out_pad)],
            out_specs=row_spec(out_pad),
            out_shape=jax.ShapeDtypeStruct((n_pad, out_pad), jnp.float32),
            compiler_params=_compiler_params(resident, tile_bytes,
                                             ("parallel",)),
            cost_estimate=pl.CostEstimate(
                flops=2 * n_pad * in_pad * out_pad,
                transcendentals=0,
                bytes_accessed=x_p.size * 2 + resident + n_pad * out_pad * 4),
        )(x_p, w_p, b_p)
        return out_p[:n, :out_dim]

    # ---- num_layers >= 2: chained layer calls, two-phase BN ------------------
    bns = params["bn"]
    num_hidden = num_layers - 1

    # Layer 1: matmul + batch stats (hidden bias dropped: BN cancels it).
    w1 = linears[0][0]
    h_pad = _round_up(w1.shape[1], LANE)
    w1_p = _pad2(w1, in_pad, h_pad, jnp.bfloat16)
    first = functools.partial(_first_layer_kernel, tile_rows=tm, n_valid=n,
                              num_tiles=num_tiles)
    resident = w1_p.size * 2 + 2 * h_pad * 4
    tile_bytes = tm * in_pad * 2 + tm * h_pad * 4
    y, stats = pl.pallas_call(
        first,
        grid=(num_tiles,),
        in_specs=[row_spec(in_pad), full_spec(in_pad, h_pad)],
        out_specs=(row_spec(h_pad), full_spec(2, h_pad)),
        out_shape=(jax.ShapeDtypeStruct((n_pad, h_pad), jnp.float32),
                   jax.ShapeDtypeStruct((2, h_pad), jnp.float32)),
        scratch_shapes=[pltpu.VMEM((2, h_pad), jnp.float32)],
        compiler_params=_compiler_params(resident, tile_bytes, ("arbitrary",)),
        cost_estimate=pl.CostEstimate(
            flops=2 * n_pad * in_pad * h_pad + 6 * n_pad * h_pad,
            transcendentals=0,
            bytes_accessed=x_p.size * 2 + w1_p.size * 2
            + n_pad * h_pad * 4 + 2 * h_pad * 4),
    )(x_p, w1_p)

    prev_pad = h_pad
    # Middle layers: BN(prev) + ReLU + matmul + stats; one batch sweep each.
    for j in range(1, num_hidden):
        gamma, beta = bns[j - 1]
        wj = linears[j][0]
        hj_pad = _round_up(wj.shape[1], LANE)
        g_p = _pad2(gamma, 1, prev_pad)
        be_p = _pad2(beta, 1, prev_pad)
        w_p = _pad2(wj, prev_pad, hj_pad, jnp.bfloat16)
        mid = functools.partial(_mid_layer_kernel, tile_rows=tm, n_valid=n,
                                num_tiles=num_tiles, mask_rows=has_row_pad)
        resident = (w_p.size * 2 + (g_p.size + be_p.size) * 4
                    + 2 * prev_pad * 4 + 2 * hj_pad * 4)
        tile_bytes = tm * prev_pad * 4 + tm * hj_pad * 4
        y, stats = pl.pallas_call(
            mid,
            grid=(num_tiles,),
            in_specs=[row_spec(prev_pad), full_spec(2, prev_pad),
                      full_spec(1, prev_pad), full_spec(1, prev_pad),
                      full_spec(prev_pad, hj_pad)],
            out_specs=(row_spec(hj_pad), full_spec(2, hj_pad)),
            out_shape=(jax.ShapeDtypeStruct((n_pad, hj_pad), jnp.float32),
                       jax.ShapeDtypeStruct((2, hj_pad), jnp.float32)),
            scratch_shapes=[pltpu.VMEM((2, hj_pad), jnp.float32)],
            compiler_params=_compiler_params(resident, tile_bytes,
                                             ("arbitrary",)),
            cost_estimate=pl.CostEstimate(
                flops=2 * n_pad * prev_pad * hj_pad + 10 * n_pad * prev_pad,
                transcendentals=num_tiles * prev_pad,
                bytes_accessed=n_pad * prev_pad * 4 + w_p.size * 2
                + n_pad * hj_pad * 4 + 2 * (prev_pad + hj_pad) * 4),
        )(y, stats, g_p, be_p, w_p)
        prev_pad = hj_pad

    # Final layer: BN(last hidden) + ReLU + linear with bias.
    gamma, beta = bns[-1]
    wl, bl = linears[-1]
    g_p = _pad2(gamma, 1, prev_pad)
    be_p = _pad2(beta, 1, prev_pad)
    w_p = _pad2(wl, prev_pad, out_pad, jnp.bfloat16)
    b_p = _pad2(bl, 1, out_pad)
    resident = (w_p.size * 2 + (g_p.size + be_p.size + b_p.size) * 4
                + 2 * prev_pad * 4)
    tile_bytes = tm * prev_pad * 4 + tm * out_pad * 4
    out_p = pl.pallas_call(
        _final_layer_kernel,
        grid=(num_tiles,),
        in_specs=[row_spec(prev_pad), full_spec(2, prev_pad),
                  full_spec(1, prev_pad), full_spec(1, prev_pad),
                  full_spec(prev_pad, out_pad), full_spec(1, out_pad)],
        out_specs=row_spec(out_pad),
        out_shape=jax.ShapeDtypeStruct((n_pad, out_pad), jnp.float32),
        compiler_params=_compiler_params(resident, tile_bytes, ("parallel",)),
        cost_estimate=pl.CostEstimate(
            flops=2 * n_pad * prev_pad * out_pad + 10 * n_pad * prev_pad,
            transcendentals=num_tiles * prev_pad,
            bytes_accessed=n_pad * prev_pad * 4 + w_p.size * 2
            + n_pad * out_pad * 4),
    )(y, stats, g_p, be_p, w_p, b_p)

    return out_p[:n, :out_dim]


# ----------------------------------------------------------------------------
# Parameter init (PyTorch-style) and pure-JAX reference
# ----------------------------------------------------------------------------
def init_mlp_params(key, num_layers, input_dim, hidden_dim, output_dim):
    """Deterministic PyTorch-style (uniform +-1/sqrt(fan_in)) init, logical shapes."""
    if num_layers < 1:
        raise ValueError("number of layers should be positive!")
    params = {"linears": [], "bn": []}
    if num_layers == 1:
        dims = [(input_dim, output_dim)]
    else:
        dims = [(input_dim, hidden_dim)]
        dims += [(hidden_dim, hidden_dim)] * (num_layers - 2)
        dims += [(hidden_dim, output_dim)]
    for (fan_in, fan_out) in dims:
        key, kw, kb = jax.random.split(key, 3)
        bound = 1.0 / jnp.sqrt(fan_in)
        w = jax.random.uniform(kw, (fan_in, fan_out), jnp.float32, -bound, bound)
        b = jax.random.uniform(kb, (1, fan_out), jnp.float32, -bound, bound)
        params["linears"].append((w, b))
    if num_layers > 1:
        for _ in range(num_layers - 1):
            gamma = jnp.ones((1, hidden_dim), jnp.float32)
            beta = jnp.zeros((1, hidden_dim), jnp.float32)
            params["bn"].append((gamma, beta))
    return params


def mlp_reference(params, x, num_layers):
    """Pure-JAX reference (biases included) in the kernel's bf16-matmul regime."""
    def mm(a, w):
        return jnp.dot(a.astype(jnp.bfloat16), w.astype(jnp.bfloat16),
                       preferred_element_type=jnp.float32)

    if num_layers == 1:
        w, b = params["linears"][0]
        return mm(x, w) + b
    h = x
    for i in range(num_layers - 1):
        w, b = params["linears"][i]
        gamma, beta = params["bn"][i]
        y = mm(h, w) + b
        mean = jnp.mean(y, axis=0, keepdims=True)
        var = jnp.mean((y - mean) ** 2, axis=0, keepdims=True)
        y = (y - mean) / jnp.sqrt(var + BN_EPS) * gamma + beta
        h = jax.nn.relu(y)
    w, b = params["linears"][-1]
    return mm(h, w) + b


if __name__ == "__main__":
    key = jax.random.PRNGKey(0)

    # Case 1: 3-layer MLP, batch not a multiple of 16 (single tile, masked rows).
    num_layers, input_dim, hidden_dim, output_dim, batch = 3, 16, 32, 8, 10
    key, kx, kp = jax.random.split(key, 3)
    x = jax.random.normal(kx, (batch, input_dim), jnp.float32)
    params = init_mlp_params(kp, num_layers, input_dim, hidden_dim, output_dim)

    out = jax.block_until_ready(mlp_forward(params, x, num_layers))
    ref = mlp_reference(params, x, num_layers)
    assert out.shape == (batch, output_dim)
    assert jnp.allclose(out, ref, atol=2e-2, rtol=2e-2), "mismatch (3-layer)"

    # Case 2: multi-tile batch grid (cross-tile Welford/Chan BN combine +
    # partial last tile with masked padded rows).
    batch2 = 40
    key, kx2 = jax.random.split(key)
    x2 = jax.random.normal(kx2, (batch2, input_dim), jnp.float32)
    out2 = jax.block_until_ready(mlp_forward(params, x2, num_layers, tile_rows=16))
    ref2 = mlp_reference(params, x2, num_layers)
    assert out2.shape == (batch2, output_dim)
    assert jnp.allclose(out2, ref2, atol=2e-2, rtol=2e-2), "mismatch (multi-tile)"

    # Case 3: num_layers == 1 (pure linear) branch.
    params1 = init_mlp_params(jax.random.PRNGKey(1), 1, input_dim, hidden_dim,
                              output_dim)
    out1 = jax.block_until_ready(mlp_forward(params1, x, 1))
    ref1 = mlp_reference(params1, x, 1)
    assert out1.shape == (batch, output_dim)
    assert jnp.allclose(out1, ref1, atol=2e-2, rtol=2e-2), "mismatch (1-layer)"

    print("KERNEL_OK")
</pallas_src>

<mosaic_0001>
module attributes {stable_mosaic.version = 11 : i64} {
  func.func @_first_layer_kernel(%arg0: i32, %arg1: memref<16x128xbf16, #tpu.memory_space<vmem>>, %arg2: memref<128x128xbf16, #tpu.memory_space<vmem>>, %arg3: memref<16x128xf32, #tpu.memory_space<vmem>>, %arg4: memref<2x128xf32, #tpu.memory_space<vmem>>, %arg5: memref<2x128xf32, #tpu.memory_space<vmem>>) attributes {dimension_semantics = [#tpu.dimension_semantics<arbitrary>], iteration_bounds = array<i64: 1>, scalar_prefetch = 0 : i64, scratch_operands = 1 : i64, tpu.core_type = #tpu.core_type<tc>, window_params = [{transform_indices = @transform_0, window_bounds = array<i64: 16, 128>}, {pipeline_mode = #tpu.pipeline_mode<synchronous>, transform_indices = @transform_1, window_bounds = array<i64: 128, 128>}, {transform_indices = @transform_2, window_bounds = array<i64: 16, 128>}, {pipeline_mode = #tpu.pipeline_mode<synchronous>, transform_indices = @transform_3, window_bounds = array<i64: 2, 128>}]} {
    %c0 = arith.constant 0 : index
    %c0_0 = arith.constant 0 : index
    %0 = vector.load %arg1[%c0, %c0_0] : memref<16x128xbf16, #tpu.memory_space<vmem>>, vector<16x128xbf16>
    %c0_1 = arith.constant 0 : index
    %c0_2 = arith.constant 0 : index
    %1 = vector.load %arg2[%c0_1, %c0_2] : memref<128x128xbf16, #tpu.memory_space<vmem>>, vector<128x128xbf16>
    %cst = arith.constant dense<0.000000e+00> : vector<16x128xf32>
    %2 = tpu.matmul %0, %1, %cst {dimension_numbers = #tpu.dot_dimension_numbers<[1], [0], [0], [1], [0, 0, 1, 1], [], []>} : vector<16x128xbf16>, vector<128x128xbf16>, vector<16x128xf32> -> vector<16x128xf32>
    %c0_3 = arith.constant 0 : index
    %c0_4 = arith.constant 0 : index
    %3 = vector.load %arg3[%c0_3, %c0_4] : memref<16x128xf32, #tpu.memory_space<vmem>>, vector<16x128xf32>
    tpu.vector_store %arg3[%c0_3, %c0_4], %2 {strides = array<i32>} : memref<16x128xf32, #tpu.memory_space<vmem>>, vector<16x128xf32>,
    %c16_i32 = arith.constant 16 : i32
    %4 = arith.muli %arg0, %c16_i32 : i32
    %c10_i32 = arith.constant 10 : i32
    %5 = arith.subi %c10_i32, %4 : i32
    %c16_i32_5 = arith.constant 16 : i32
    %6 = arith.minsi %c16_i32_5, %5 : i32
    %7 = arith.sitofp %6 : i32 to f32
    %cst_6 = arith.constant dense<0.000000e+00> : vector<128xf32>
    %8 = vector.multi_reduction <add>, %2, %cst_6 [0] : vector<16x128xf32> to vector<128xf32>
    %9 = vector.shape_cast %8 : vector<128xf32> to vector<1x128xf32>
    %10 = vector.broadcast %7 : f32 to vector<1x128xf32>
    %11 = arith.divf %9, %10 : vector<1x128xf32>
    %12 = vector.broadcast %11 : vector<1x128xf32> to vector<16x128xf32>
    %13 = arith.subf %2, %12 : vector<16x128xf32>
    %14 = arith.mulf %13, %13 : vector<16x128xf32>
    %cst_7 = arith.constant dense<0.000000e+00> : vector<128xf32>
    %15 = vector.multi_reduction <add>, %14, %cst_7 [0] : vector<16x128xf32> to vector<128xf32>
    %16 = vector.shape_cast %15 : vector<128xf32> to vector<1x128xf32>
    %cst_8 = arith.constant 1.600000e+01 : f32
    %17 = arith.subf %cst_8, %7 : f32
    %18 = arith.mulf %11, %11 : vector<1x128xf32>
    %19 = vector.broadcast %17 : f32 to vector<1x128xf32>
    %20 = arith.mulf %19, %18 : vector<1x128xf32>
    %21 = arith.subf %16, %20 : vector<1x128xf32>
    %c0_i32 = arith.constant 0 : i32
    %22 = arith.cmpi eq, %arg0, %c0_i32 : i32
    %23 = arith.extui %22 : i1 to i32
    %c0_i32_9 = arith.constant 0 : i32
    %24 = arith.cmpi ne, %23, %c0_i32_9 : i32
    scf.if %24 {
      %c0_14 = arith.constant 0 : index
      %c0_15 = arith.constant 0 : index
      %31 = vector.load %arg5[%c0_14, %c0_15] : memref<2x128xf32, #tpu.memory_space<vmem>>, vector<1x128xf32>
      tpu.vector_store %arg5[%c0_14, %c0_15], %11 {strides = array<i32>} : memref<2x128xf32, #tpu.memory_space<vmem>>, vector<1x128xf32>,
      %c1 = arith.constant 1 : index
      %c0_16 = arith.constant 0 : index
      %32 = vector.load %arg5[%c1, %c0_16] : memref<2x128xf32, #tpu.memory_space<vmem>>, vector<1x128xf32>
      tpu.vector_store %arg5[%c1, %c0_16], %21 {strides = array<i32>} : memref<2x128xf32, #tpu.memory_space<vmem>>, vector<1x128xf32>,
    } else {
    }
    %c0_i32_10 = arith.constant 0 : i32
    %25 = arith.cmpi sgt, %arg0, %c0_i32_10 : i32
    %26 = arith.extui %25 : i1 to i32
    %c0_i32_11 = arith.constant 0 : i32
    %27 = arith.cmpi ne, %26, %c0_i32_11 : i32
    scf.if %27 {
      %c16_i32_14 = arith.constant 16 : i32
      %31 = arith.muli %arg0, %c16_i32_14 : i32
      %32 = arith.sitofp %31 : i32 to f32
      %c0_15 = arith.constant 0 : index
      %c0_16 = arith.constant 0 : index
      %33 = vector.load %arg5[%c0_15, %c0_16] : memref<2x128xf32, #tpu.memory_space<vmem>>, vector<1x128xf32>
      %c1 = arith.constant 1 : index
      %c0_17 = arith.constant 0 : index
      %34 = vector.load %arg5[%c1, %c0_17] : memref<2x128xf32, #tpu.memory_space<vmem>>, vector<1x128xf32>
      %35 = arith.subf %11, %33 : vector<1x128xf32>
      %36 = arith.addf %32, %7 : f32
      %37 = arith.divf %7, %36 : f32
      %38 = vector.broadcast %37 : f32 to vector<1x128xf32>
      %39 = arith.mulf %35, %38 : vector<1x128xf32>
      %40 = arith.addf %33, %39 : vector<1x128xf32>
      %c0_18 = arith.constant 0 : index
      %c0_19 = arith.constant 0 : index
      %41 = vector.load %arg5[%c0_18, %c0_19] : memref<2x128xf32, #tpu.memory_space<vmem>>, vector<1x128xf32>
      tpu.vector_store %arg5[%c0_18, %c0_19], %40 {strides = array<i32>} : memref<2x128xf32, #tpu.memory_space<vmem>>, vector<1x128xf32>,
      %42 = arith.addf %34, %21 : vector<1x128xf32>
      %43 = arith.mulf %35, %35 : vector<1x128xf32>
      %44 = arith.mulf %32, %37 : f32
      %45 = vector.broadcast %44 : f32 to vector<1x128xf32>
      %46 = arith.mulf %43, %45 : vector<1x128xf32>
      %47 = arith.addf %42, %46 : vector<1x128xf32>
      %c1_20 = arith.constant 1 : index
      %c0_21 = arith.constant 0 : index
      %48 = vector.load %arg5[%c1_20, %c0_21] : memref<2x128xf32, #tpu.memory_space<vmem>>, vector<1x128xf32>
      tpu.vector_store %arg5[%c1_20, %c0_21], %47 {strides = array<i32>} : memref<2x128xf32, #tpu.memory_space<vmem>>, vector<1x128xf32>,
    } else {
    }
    %c0_i32_12 = arith.constant 0 : i32
    %28 = arith.cmpi eq, %arg0, %c0_i32_12 : i32
    %29 = arith.extui %28 : i1 to i32
    %c0_i32_13 = arith.constant 0 : i32
    %30 = arith.cmpi ne, %29, %c0_i32_13 : i32
    scf.if %30 {
      %c0_14 = arith.constant 0 : index
      %c0_15 = arith.constant 0 : index
      %31 = vector.load %arg5[%c0_14, %c0_15] : memref<2x128xf32, #tpu.memory_space<vmem>>, vector<1x128xf32>
      %c0_16 = arith.constant 0 : index
      %c0_17 = arith.constant 0 : index
      %32 = vector.load %arg4[%c0_16, %c0_17] : memref<2x128xf32, #tpu.memory_space<vmem>>, vector<1x128xf32>
      tpu.vector_store %arg4[%c0_16, %c0_17], %31 {strides = array<i32>} : memref<2x128xf32, #tpu.memory_space<vmem>>, vector<1x128xf32>,
      %c1 = arith.constant 1 : index
      %c0_18 = arith.constant 0 : index
      %33 = vector.load %arg5[%c1, %c0_18] : memref<2x128xf32, #tpu.memory_space<vmem>>, vector<1x128xf32>
      %cst_19 = arith.constant 1.000000e-01 : f32
      %34 = vector.broadcast %cst_19 : f32 to vector<1x128xf32>
      %35 = arith.mulf %33, %34 : vector<1x128xf32>
      %c1_20 = arith.constant 1 : index
      %c0_21 = arith.constant 0 : index
      %36 = vector.load %arg4[%c1_20, %c0_21] : memref<2x128xf32, #tpu.memory_space<vmem>>, vector<1x128xf32>
      tpu.vector_store %arg4[%c1_20, %c0_21], %35 {strides = array<i32>} : memref<2x128xf32, #tpu.memory_space<vmem>>, vector<1x128xf32>,
    } else {
    }
    return
  }
  func.func @transform_0(%arg0: i32) -> (i32, i32) {
    %c0_i32 = arith.constant 0 : i32
    %c0_i32_0 = arith.constant 0 : i32
    return %arg0, %c0_i32 : i32, i32
  }
  func.func @transform_1(%arg0: i32) -> (i32, i32) {
    %c0_i32 = arith.constant 0 : i32
    %c0_i32_0 = arith.constant 0 : i32
    %c0_i32_1 = arith.constant 0 : i32
    return %c0_i32, %c0_i32_0 : i32, i32
  }
  func.func @transform_2(%arg0: i32) -> (i32, i32) {
    %c0_i32 = arith.constant 0 : i32
    %c0_i32_0 = arith.constant 0 : i32
    return %arg0, %c0_i32 : i32, i32
  }
  func.func @transform_3(%arg0: i32) -> (i32, i32) {
    %c0_i32 = arith.constant 0 : i32
    %c0_i32_0 = arith.constant 0 : i32
    %c0_i32_1 = arith.constant 0 : i32
    return %c0_i32, %c0_i32_0 : i32, i32
  }
}

</mosaic_0001>

<bundles_post_ra>
// kernel: tpu_custom_call.1
= control target key start
LH: loop header
LB: loop body
LE: loop exit
PB: predicated region body
PF: predicated region fallthrough
CT: control target
= control target key end

     0   :  { %9 = vsyncpa [#allocation4], 0  ;;  %s467_s0 = inlined_call_operand.hbm [shape: bf16[16,128], index: 0, kind: input, shape index: {}]   ;;  %s468_s1 = inlined_call_operand.hbm [shape: bf16[128,128], index: 1, kind: input, shape index: {}]   ;;  %s469_s2 = inlined_call_operand.hbm [shape: f32[16,128], index: 2, kind: output, shape index: {0}]   ;;  %s470_s3 = inlined_call_operand.hbm [shape: f32[2,128], index: 3, kind: output, shape index: {1}]  }
   0x1   :  { %10 = vsyncpa [#allocation7], 0 }
   0x2   :  { %11 = vsyncpa [#allocation5], 0 }
   0x3   :  { %12 = vsyncpa [#allocation10], 0  ;;  %s17_s14 = sshll.u32 %s467_s0, 4  ;;  %s426_s15 = smov [#allocation3]   ;;  %s18_s14 = int_to_ptr.hbm [resolvable:$true] %s17_s14 }
   0x4   :  { %s19_s16 = sshll.u32 %s426_s15, 4  ;;  %s30_s19 = sshll.u32 %s468_s1, 4  ;;  %s20_s16 = int_to_ptr.vmem [resolvable:$true] %s19_s16  ;;  %s31_s19 = int_to_ptr.hbm [resolvable:$true] %s30_s19 }
   0x5   :  { %s427_s20 = smov 64   ;;  %s428_s21 = smov 4  }
   0x6   :  { %25 = dma.hbm_to_vmem [thread:$0]  %s18_s14, 128, %s20_s16, [#allocation4], %s427_s20, %s427_s20, %s428_s21  }
   0x7   :  { %s429_s22 = smov [#allocation6]  }
   0x8   :  { %s32_s23 = sshll.u32 %s429_s22, 4  ;;  %s33_s23 = int_to_ptr.vmem [resolvable:$true] %s32_s23 }
   0x9   :  { %38 = dma.hbm_to_vmem [thread:$0]  %s31_s19, 1024, %s33_s23, [#allocation7], %s427_s20, %s427_s20, %s428_s21  }
   0xa   :  { %418 = dma.done.wait [#allocation4], 128  }
   0xb   :  { %419 = vsyncadd [#allocation4], 4294967168 }
   0xc   :  { %420 = dma.done.wait [#allocation7], 1024  }
   0xd   :  { %421 = vsyncadd [#allocation7], 4294966272  ;;  %v310_v0 = vld [vmem:[#allocation6 + $0x38] sm:$0xff]  ;;  %v309_v1 = vld [vmem:[#allocation6 + $0x30] sm:$0xff]  ;;  %v430_v9 = vmov 10.0   ;;  %s431_s0 = smov [#allocation8]  }
   0xe   :  { %119 = vmatpush.bf16.msra.mxu0 %v310_v0  ;;  %v308_v2 = vld [vmem:[#allocation6 + $0x28] sm:$0xff]  ;;  %v307_v3 = vld [vmem:[#allocation6 + $0x20] sm:$0xff]  ;;  %v306_v4 = vld [vmem:[#allocation6 + $0x18] sm:$0xff]  ;;  %320 = vrcp.f32 %v430_v9  ;;  %s234_s1 = sshll.u32 %s431_s0, 4  ;;  %s236_s26 = sshll.u32 %s469_s2, 4  ;;  %s235_s1 = int_to_ptr.vmem [resolvable:$true] %s234_s1  ;;  %s237_s26 = int_to_ptr.hbm [resolvable:$true] %s236_s26 }
   0xf   :  { %v305_v5 = vld [vmem:[#allocation6 + $0x10] sm:$0xff]  ;;  %v304_v6 = vld [vmem:[#allocation6 + $0x8] sm:$0xff]  ;;  %v303_v7 = vld [vmem:[#allocation6] sm:$0xff]  ;;  %s432_s27 = smov 128   ;;  %s433_s28 = smov 8  }
  0x10   :  { %v302_v8 = vld [vmem:[#allocation3] sm:$0xff]  ;;  %s434_s2 = smov [#allocation9]   ;;  %s250_s5 = sshll.u32 %s470_s3, 4  ;;  %s251_s5 = int_to_ptr.hbm [resolvable:$true] %s250_s5 }
  0x11   :  { %s248_s29 = sshll.u32 %s434_s2, 4  ;;  %s249_s29 = int_to_ptr.vmem [resolvable:$true] %s248_s29 }
  0x12   :  { %120 = vmatpush.bf16.msra.mxu0 %v309_v1 }
  0x14   :  { %v321_v11 = vpop.eup %320 }
  0x15   :  { %v149_v12 = vmul.f32 10.0, %v321_v11  ;;  %vm154_vm0 = vweird.f32 %v321_v11 }
  0x16   :  { %121 = vmatpush.bf16.msra.mxu0 %v308_v2 }
  0x17   :  { %v150_v14 = vsub.f32 1.0, %v149_v12 }
  0x19   :  { %v151_v17 = vmul.f32 %v321_v11, %v150_v14 }
  0x1a   :  { %122 = vmatpush.bf16.msra.mxu0 %v307_v3 }
  0x1b   :  { %v152_v20 = vadd.f32 %v321_v11, %v151_v17 }
  0x1d   :  { %v156_v23 = vsel %vm154_vm0, %v321_v11, %v152_v20 }
  0x1e   :  { %123 = vmatpush.bf16.msra.mxu0 %v306_v4 }
  0x22   :  { %124 = vmatpush.bf16.msra.mxu0 %v305_v5 }
  0x26   :  { %125 = vmatpush.bf16.msra.mxu0 %v304_v6 }
  0x2a   :  { %126 = vmatpush.bf16.msra.mxu0 %v303_v7 }
  0x2d   :  { %127 = vmatmul.bf16.vlgmr.msra.gmra.mxu0 %v302_v8 }
  0xaa   :  { %v128_v10 = vpop.f32.mrf.mxu0 }
  0xab   :  { %133 = vst [vmem:[#allocation8] sm:$0xff] %v128_v10 }
  0xb2   :  { %v130_v13 = vpop.f32.mrf.mxu0 }
  0xb3   :  { %134 = vst [vmem:[#allocation8 + $0x8] sm:$0xff] %v130_v13  ;;  %v140_v15 = vadd.f32 %v130_v13, %v128_v10 }
  0xb4   :  { %242 = dma.vmem_to_hbm [thread:$0]  %s235_s1, 256, %s237_s26, [#allocation5], %s432_s27, %s432_s27, %s433_s28  }
  0xb5   :  { %v141_v16 = vrot.slane %v140_v15, 4 }
  0xb7   :  { %v142_v18 = vadd.f32 %v141_v16, %v140_v15 }
  0xb9   :  { %v143_v19 = vrot.slane %v142_v18, 2 }
  0xbb   :  { %v144_v21 = vadd.f32 %v143_v19, %v142_v18 }
  0xbd   :  { %v145_v22 = vrot.slane %v144_v21, 1 }
  0xbf   :  { %v146_v24 = vadd.f32 %v145_v22, %v144_v21 }
  0xc1   :  { %v162_v25 = vmul.f32 %v156_v23, %v146_v24 }
  0xc3   :  { %v163_v26 = vsub.f32 %v128_v10, %v162_v25  ;;  %v164_v27 = vsub.f32 %v130_v13, %v162_v25  ;;  %183 = vst [vmem:[#allocation2] sm:$0x1] %v162_v25  ;;  %v175_v36 = vmul.f32 %v162_v25, %v162_v25 }
  0xc5   :  { %v165_v28 = vmul.f32 %v163_v26, %v163_v26  ;;  %v166_v29 = vmul.f32 %v164_v27, %v164_v27  ;;  %v177_v39 = vmul.f32 6.0, %v175_v36 }
  0xc7   :  { %v167_v30 = vadd.f32 %v166_v29, %v165_v28 }
  0xc9   :  { %v168_v31 = vrot.slane %v167_v30, 4 }
  0xca   :  { %v225_v32 = vld [vmem:[#allocation2] sm:$0x1] }
  0xcb   :  { %v169_v33 = vadd.f32 %v168_v31, %v167_v30  ;;  %226 = vst [vmem:[#allocation9] sm:$0x1] %v225_v32 }
  0xcd   :  { %v170_v34 = vrot.slane %v169_v33, 2 }
  0xcf   :  { %v171_v35 = vadd.f32 %v170_v34, %v169_v33 }
  0xd1   :  { %v172_v37 = vrot.slane %v171_v35, 1 }
  0xd3   :  { %v173_v38 = vadd.f32 %v172_v37, %v171_v35 }
  0xd5   :  { %v178_v40 = vsub.f32 %v173_v38, %v177_v39 }
  0xd7   :  { %184 = vst [vmem:[#allocation2 + $0x1] sm:$0x1] %v178_v40 }
  0xde   :  { %v227_v41 = vld [vmem:[#allocation2 + $0x1] sm:$0x1] }
  0xdf   :  { %v228_v42 = vmul.f32 0.1, %v227_v41 }
  0xe1   :  { %229 = vst [vmem:[#allocation9 + $0x1] sm:$0x1] %v228_v42 }
  0xe2   :  { %253 = dma.vmem_to_hbm [thread:$0]  %s249_s29, 32, %s251_s5, [#allocation10]  }
  0xe3   :  { %422 = dma.done.wait [#allocation5], 256  }
  0xe4   :  { %423 = vsyncadd [#allocation5], 4294967040 }
  0xe5   :  { %424 = dma.done.wait [#allocation10], 32  }
  0xe6   :  { %425 = vsyncadd [#allocation10], 4294967264 }
  0xe7   :  { %262 = vsyncpa [#allocation4], 1 }
  0xe8   :  { %263 = vsyncpa [#allocation7], 1 }
  0xe9   :  { %264 = vsyncpa [#allocation5], 1 }
  0xea   :  { %265 = vsyncpa [#allocation10], 1 }

</bundles_post_ra>
